<compile_context>
chip_gen: v7x
topology: tpu7x:2x2x1
jax: 0.10.0
libtpu: 0.0.40
codegen_flags: <defaults>
</compile_context>

<pallas_src>
import functools

import jax
import jax.numpy as jnp
from jax.experimental import pallas as pl
from jax.experimental.pallas import tpu as pltpu


NEG_PAD = float(-(2 ** 32) + 1)   # matches torch's  -2 ** 32 + 1


def _pick_tile(desired, full):
    t = min(desired, full)
    return t if full % t == 0 else full


# ----------------------------------------------------------------------------
# Kernel 1: fused Linear + ReLU  (tiled matmul with f32 accumulator)
# ----------------------------------------------------------------------------
def _linear_relu_kernel(x_ref, w_ref, b_ref, o_ref, acc_ref):
    k = pl.program_id(2)

    @pl.when(k == 0)
    def _():
        acc_ref[...] = jnp.zeros_like(acc_ref)

    acc_ref[...] += jnp.dot(x_ref[...], w_ref[...],
                            preferred_element_type=jnp.float32)

    @pl.when(k == pl.num_programs(2) - 1)
    def _():
        y = acc_ref[...] + b_ref[...]          # bias broadcast over rows
        y = jnp.maximum(y, 0.0)                # ReLU
        o_ref[...] = y.astype(o_ref.dtype)


def linear_relu(x, w_t, bias, *, tm=256, tn=256, tk=256):
    """relu(x @ w_t + bias).  x: (M, K); w_t: (K, N) pre-transposed; bias: (N,)."""
    M, K = x.shape
    Kw, N = w_t.shape
    assert K == Kw
    tm = _pick_tile(tm, M)
    tn = _pick_tile(tn, N)
    tk = _pick_tile(tk, K)
    grid = (M // tm, N // tn, K // tk)
    b2 = bias.reshape(1, N)
    return pl.pallas_call(
        _linear_relu_kernel,
        out_shape=jax.ShapeDtypeStruct((M, N), x.dtype),
        grid_spec=pltpu.PrefetchScalarGridSpec(
            num_scalar_prefetch=0,
            grid=grid,
            in_specs=[
                pl.BlockSpec((tm, tk), lambda i, j, k: (i, k)),
                # weight index_map depends only on (j, k) -> reused across the M axis
                pl.BlockSpec((tk, tn), lambda i, j, k: (k, j)),
                pl.BlockSpec((1, tn), lambda i, j, k: (0, j)),
            ],
            out_specs=pl.BlockSpec((tm, tn), lambda i, j, k: (i, j)),
            scratch_shapes=[pltpu.VMEM((tm, tn), jnp.float32)],
        ),
        compiler_params=pltpu.CompilerParams(
            dimension_semantics=("parallel", "parallel", "arbitrary")),
    )(x, w_t, b2)


# ----------------------------------------------------------------------------
# Kernel 2: scaled dot-product attention, one (head, batch) pair per grid step
# ----------------------------------------------------------------------------
def _attention_kernel(q_ref, k_ref, v_ref, kmask_ref, qmask_ref, o_ref, *,
                      scale, causal):
    q = q_ref[...]            # (T_q, d)
    k = k_ref[...]            # (T_k, d)
    v = v_ref[...]            # (T_k, d)
    kmask = kmask_ref[...]    # (1, T_k)
    qmask = qmask_ref[...]    # (T_q, 1)

    s = jax.lax.dot_general(q, k, (((1,), (1,)), ((), ())),
                            preferred_element_type=jnp.float32) * scale
    s = jnp.where(kmask == 0.0, NEG_PAD, s)          # key padding mask
    if causal:
        tq, tk_ = s.shape
        row = jax.lax.broadcasted_iota(jnp.int32, (tq, tk_), 0)
        col = jax.lax.broadcasted_iota(jnp.int32, (tq, tk_), 1)
        s = jnp.where(col > row, NEG_PAD, s)

    s = s - jnp.max(s, axis=-1, keepdims=True)
    p = jnp.exp(s)
    p = p / jnp.sum(p, axis=-1, keepdims=True)
    p = p * qmask                                    # zero rows for padded queries
    # TODO(synk): output_dropout not implemented (module default dropout_rate=0).
    out = jnp.dot(p.astype(v.dtype), v, preferred_element_type=jnp.float32)
    o_ref[...] = out.astype(o_ref.dtype)


def attention_core(q_h, k_h, v_h, kmask, qmask, *, scale, causal):
    """q_h/k_h/v_h: (H, N, T, d); kmask: (N, 1, T_k); qmask: (N, T_q, 1)."""
    H, N, T_q, d = q_h.shape
    T_k = k_h.shape[2]
    kernel = functools.partial(_attention_kernel, scale=scale, causal=causal)
    return pl.pallas_call(
        kernel,
        out_shape=jax.ShapeDtypeStruct((H, N, T_q, d), q_h.dtype),
        grid_spec=pltpu.PrefetchScalarGridSpec(
            num_scalar_prefetch=0,
            grid=(H, N),
            in_specs=[
                pl.BlockSpec((None, None, T_q, d), lambda h, n: (h, n, 0, 0)),
                pl.BlockSpec((None, None, T_k, d), lambda h, n: (h, n, 0, 0)),
                pl.BlockSpec((None, None, T_k, d), lambda h, n: (h, n, 0, 0)),
                pl.BlockSpec((None, 1, T_k), lambda h, n: (n, 0, 0)),
                pl.BlockSpec((None, T_q, 1), lambda h, n: (n, 0, 0)),
            ],
            out_specs=pl.BlockSpec((None, None, T_q, d),
                                   lambda h, n: (h, n, 0, 0)),
        ),
        compiler_params=pltpu.CompilerParams(
            dimension_semantics=("parallel", "parallel")),
    )(q_h, k_h, v_h, kmask, qmask)


# ----------------------------------------------------------------------------
# Kernel 3: residual add + layer normalization (torch semantics)
# ----------------------------------------------------------------------------
def _residual_layernorm_kernel(x_ref, res_ref, g_ref, b_ref, o_ref, *,
                               epsilon, residual, features):
    y = x_ref[...].astype(jnp.float32)
    if residual:
        y = y + res_ref[...].astype(jnp.float32)
    mean = jnp.mean(y, axis=-1, keepdims=True)
    diff = y - mean
    # torch.Tensor.std is the unbiased estimator (divide by C-1); denom is std+eps.
    var = jnp.sum(diff * diff, axis=-1, keepdims=True) / (features - 1)
    std = jnp.sqrt(var)
    out = g_ref[...] * diff / (std + epsilon) + b_ref[...]
    o_ref[...] = out.astype(o_ref.dtype)


def residual_layernorm(x, res, gamma, beta, *, epsilon, residual, tm=256):
    M, C = x.shape
    tm = _pick_tile(tm, M)
    kernel = functools.partial(_residual_layernorm_kernel, epsilon=epsilon,
                               residual=residual, features=C)
    return pl.pallas_call(
        kernel,
        out_shape=jax.ShapeDtypeStruct((M, C), x.dtype),
        grid_spec=pltpu.PrefetchScalarGridSpec(
            num_scalar_prefetch=0,
            grid=(M // tm,),
            in_specs=[
                pl.BlockSpec((tm, C), lambda i: (i, 0)),
                pl.BlockSpec((tm, C), lambda i: (i, 0)),
                pl.BlockSpec((1, C), lambda i: (0, 0)),
                pl.BlockSpec((1, C), lambda i: (0, 0)),
            ],
            out_specs=pl.BlockSpec((tm, C), lambda i: (i, 0)),
        ),
        compiler_params=pltpu.CompilerParams(
            dimension_semantics=("parallel",)),
    )(x, res, gamma.reshape(1, C), beta.reshape(1, C))


# ----------------------------------------------------------------------------
# Full module forward
# ----------------------------------------------------------------------------
def multihead_attention(queries, keys, values, params, *, num_heads=8,
                        causality=False, residual=True, epsilon=1e-8):
    N, T_q, F_in = queries.shape
    _, T_k, _ = keys.shape
    C = params["wq"].shape[1]
    d = C // num_heads
    scale = 1.0 / (d ** 0.5)

    # Q/K/V projections (Linear + ReLU), rows flattened to (N*T, F).
    Q = linear_relu(queries.reshape(N * T_q, F_in), params["wq"], params["bq"])
    K = linear_relu(keys.reshape(N * T_k, F_in), params["wk"], params["bk"])
    V = linear_relu(values.reshape(N * T_k, F_in), params["wv"], params["bv"])
    Q = Q.reshape(N, T_q, C)
    K = K.reshape(N, T_k, C)
    V = V.reshape(N, T_k, C)

    # Head split: (N, T, C) -> (H, N, T, d)   (== torch.cat(torch.chunk(.,dim=2),dim=0))
    Qh = Q.reshape(N, T_q, num_heads, d).transpose(2, 0, 1, 3)
    Kh = K.reshape(N, T_k, num_heads, d).transpose(2, 0, 1, 3)
    Vh = V.reshape(N, T_k, num_heads, d).transpose(2, 0, 1, 3)

    # Padding masks from the *raw* keys / queries.
    kmask = jnp.sign(jnp.abs(jnp.sum(keys, axis=-1))).reshape(N, 1, T_k)
    qmask = jnp.sign(jnp.abs(jnp.sum(queries, axis=-1))).reshape(N, T_q, 1)

    attn = attention_core(Qh, Kh, Vh, kmask, qmask, scale=scale, causal=causality)

    # Head concat back: (H, N, T_q, d) -> (N, T_q, C)
    attn = attn.transpose(1, 2, 0, 3).reshape(N, T_q, C)

    attn_flat = attn.reshape(N * T_q, C)
    res_flat = queries.reshape(N * T_q, F_in) if residual else attn_flat
    out = residual_layernorm(attn_flat, res_flat, params["gamma"], params["beta"],
                             epsilon=epsilon, residual=residual)
    return out.reshape(N, T_q, C)


# ----------------------------------------------------------------------------
# Pure-JAX reference (mirrors the PyTorch module exactly)
# ----------------------------------------------------------------------------
def reference_mha(queries, keys, values, params, *, num_heads, causality,
                  residual, epsilon):
    def proj(x, w, b):
        return jax.nn.relu(x @ w + b)

    Q = proj(queries, params["wq"], params["bq"])
    K = proj(keys, params["wk"], params["bk"])
    V = proj(values, params["wv"], params["bv"])
    N, T_q, C = Q.shape
    T_k = K.shape[1]
    h = num_heads
    d = C // h
    scale = 1.0 / (d ** 0.5)

    Q_ = jnp.concatenate(jnp.split(Q, h, axis=2), axis=0)
    K_ = jnp.concatenate(jnp.split(K, h, axis=2), axis=0)
    V_ = jnp.concatenate(jnp.split(V, h, axis=2), axis=0)

    outputs = jnp.einsum("bqd,bkd->bqk", Q_, K_) * scale
    key_masks = jnp.sign(jnp.abs(jnp.sum(keys, axis=-1)))
    key_masks = jnp.tile(key_masks, (h, 1))
    key_masks = jnp.tile(key_masks[:, None, :], (1, T_q, 1))
    padding = jnp.full(outputs.shape, NEG_PAD, outputs.dtype)
    cond = (key_masks == 0.0).astype(outputs.dtype)
    outputs = padding * cond + outputs * (1.0 - cond)
    if causality:
        tril = jnp.tril(jnp.ones((T_q, T_k), outputs.dtype))
        cond = (tril == 0.0).astype(outputs.dtype)[None]
        outputs = padding * cond + outputs * (1.0 - cond)
    outputs = jax.nn.softmax(outputs, axis=-1)
    query_masks = jnp.sign(jnp.abs(jnp.sum(queries, axis=-1)))
    query_masks = jnp.tile(query_masks, (h, 1))
    query_masks = jnp.tile(query_masks[:, :, None], (1, 1, T_k))
    outputs = outputs * query_masks
    outputs = jnp.einsum("bqk,bkd->bqd", outputs, V_)
    outputs = jnp.concatenate(jnp.split(outputs, h, axis=0), axis=2)
    if residual:
        outputs = outputs + queries
    mean = outputs.mean(-1, keepdims=True)
    std = jnp.std(outputs, axis=-1, keepdims=True, ddof=1)
    return params["gamma"] * (outputs - mean) / (std + epsilon) + params["beta"]


if __name__ == "__main__":
    # Small shapes: batch=2, seq=8, input_size=num_units=64, heads=8 (head dim 8).
    N, T, F_IN, UNITS, HEADS = 2, 8, 64, 64, 8

    key = jax.random.PRNGKey(0)
    ks = jax.random.split(key, 9)

    bound = 1.0 / (F_IN ** 0.5)

    def uinit(k, shape):
        return jax.random.uniform(k, shape, minval=-bound, maxval=bound,
                                  dtype=jnp.float32)

    params = {
        # Stored as (F_in, F_out) == PyTorch weight.T, transposed once at init.
        "wq": uinit(ks[0], (F_IN, UNITS)),
        "bq": uinit(ks[1], (UNITS,)),
        "wk": uinit(ks[2], (F_IN, UNITS)),
        "bk": uinit(ks[3], (UNITS,)),
        "wv": uinit(ks[4], (F_IN, UNITS)),
        "bv": uinit(ks[5], (UNITS,)),
        "gamma": jnp.ones((UNITS,), jnp.float32),
        "beta": jnp.zeros((UNITS,), jnp.float32),
    }

    queries = jax.random.normal(ks[6], (N, T, F_IN), dtype=jnp.float32)
    keys_in = jax.random.normal(ks[7], (N, T, F_IN), dtype=jnp.float32)
    values = jax.random.normal(ks[8], (N, T, F_IN), dtype=jnp.float32)

    # Zero one key position and one query position to exercise the padding masks.
    keys_in = keys_in.at[1, -1, :].set(0.0)
    queries = queries.at[0, 3, :].set(0.0)

    out = multihead_attention(queries, keys_in, values, params,
                              num_heads=HEADS, causality=False,
                              residual=True, epsilon=1e-8)
    out = jax.block_until_ready(out)

    ref = reference_mha(queries, keys_in, values, params,
                        num_heads=HEADS, causality=False,
                        residual=True, epsilon=1e-8)

    assert out.shape == (N, T, UNITS)
    err = jnp.max(jnp.abs(out - ref))
    assert jnp.allclose(out, ref, atol=1e-4, rtol=1e-4), f"max abs err {err}"

    print("KERNEL_OK")
</pallas_src>

<mosaic_0001>
module attributes {stable_mosaic.version = 11 : i64} {
  func.func @_linear_relu_kernel(%arg0: i32, %arg1: i32, %arg2: i32, %arg3: memref<16x64xf32, #tpu.memory_space<vmem>>, %arg4: memref<64x64xf32, #tpu.memory_space<vmem>>, %arg5: memref<1x64xf32, #tpu.memory_space<vmem>>, %arg6: memref<16x64xf32, #tpu.memory_space<vmem>>, %arg7: memref<16x64xf32, #tpu.memory_space<vmem>>) attributes {dimension_semantics = [#tpu.dimension_semantics<parallel>, #tpu.dimension_semantics<parallel>, #tpu.dimension_semantics<arbitrary>], iteration_bounds = array<i64: 1, 1, 1>, scalar_prefetch = 0 : i64, scratch_operands = 1 : i64, tpu.core_type = #tpu.core_type<tc>, window_params = [{transform_indices = @transform_0, window_bounds = array<i64: 16, 64>}, {transform_indices = @transform_1, window_bounds = array<i64: 64, 64>}, {transform_indices = @transform_2, window_bounds = array<i64: 1, 64>}, {transform_indices = @transform_3, window_bounds = array<i64: 16, 64>}]} {
    %c0_i32 = arith.constant 0 : i32
    %0 = arith.cmpi eq, %arg2, %c0_i32 : i32
    %1 = arith.extui %0 : i1 to i32
    %c0_i32_0 = arith.constant 0 : i32
    %2 = arith.cmpi ne, %1, %c0_i32_0 : i32
    scf.if %2 {
      %cst_10 = arith.constant 0.000000e+00 : f32
      %12 = vector.broadcast %cst_10 : f32 to vector<16x64xf32>
      %c0_11 = arith.constant 0 : index
      %c0_12 = arith.constant 0 : index
      %13 = vector.load %arg7[%c0_11, %c0_12] : memref<16x64xf32, #tpu.memory_space<vmem>>, vector<16x64xf32>
      tpu.vector_store %arg7[%c0_11, %c0_12], %12 {strides = array<i32>} : memref<16x64xf32, #tpu.memory_space<vmem>>, vector<16x64xf32>,
    } else {
    }
    %c0 = arith.constant 0 : index
    %c0_1 = arith.constant 0 : index
    %3 = vector.load %arg7[%c0, %c0_1] : memref<16x64xf32, #tpu.memory_space<vmem>>, vector<16x64xf32>
    %c0_2 = arith.constant 0 : index
    %c0_3 = arith.constant 0 : index
    %4 = vector.load %arg3[%c0_2, %c0_3] : memref<16x64xf32, #tpu.memory_space<vmem>>, vector<16x64xf32>
    %c0_4 = arith.constant 0 : index
    %c0_5 = arith.constant 0 : index
    %5 = vector.load %arg4[%c0_4, %c0_5] : memref<64x64xf32, #tpu.memory_space<vmem>>, vector<64x64xf32>
    %cst = arith.constant dense<0.000000e+00> : vector<16x64xf32>
    %6 = tpu.matmul %4, %5, %cst {dimension_numbers = #tpu.dot_dimension_numbers<[1], [0], [0], [1], [0, 0, 1, 1], [], []>} : vector<16x64xf32>, vector<64x64xf32>, vector<16x64xf32> -> vector<16x64xf32>
    %7 = arith.addf %3, %6 : vector<16x64xf32>
    %c0_6 = arith.constant 0 : index
    %c0_7 = arith.constant 0 : index
    %8 = vector.load %arg7[%c0_6, %c0_7] : memref<16x64xf32, #tpu.memory_space<vmem>>, vector<16x64xf32>
    tpu.vector_store %arg7[%c0_6, %c0_7], %7 {strides = array<i32>} : memref<16x64xf32, #tpu.memory_space<vmem>>, vector<16x64xf32>,
    %c0_i32_8 = arith.constant 0 : i32
    %9 = arith.cmpi eq, %arg2, %c0_i32_8 : i32
    %10 = arith.extui %9 : i1 to i32
    %c0_i32_9 = arith.constant 0 : i32
    %11 = arith.cmpi ne, %10, %c0_i32_9 : i32
    scf.if %11 {
      %c0_10 = arith.constant 0 : index
      %c0_11 = arith.constant 0 : index
      %12 = vector.load %arg7[%c0_10, %c0_11] : memref<16x64xf32, #tpu.memory_space<vmem>>, vector<16x64xf32>
      %c0_12 = arith.constant 0 : index
      %c0_13 = arith.constant 0 : index
      %13 = vector.load %arg5[%c0_12, %c0_13] : memref<1x64xf32, #tpu.memory_space<vmem>>, vector<1x64xf32>
      %14 = vector.broadcast %13 : vector<1x64xf32> to vector<16x64xf32>
      %15 = arith.addf %12, %14 : vector<16x64xf32>
      %cst_14 = arith.constant 0.000000e+00 : f32
      %16 = vector.broadcast %cst_14 : f32 to vector<16x64xf32>
      %17 = arith.maximumf %15, %16 : vector<16x64xf32>
      %c0_15 = arith.constant 0 : index
      %c0_16 = arith.constant 0 : index
      %18 = vector.load %arg6[%c0_15, %c0_16] : memref<16x64xf32, #tpu.memory_space<vmem>>, vector<16x64xf32>
      tpu.vector_store %arg6[%c0_15, %c0_16], %17 {strides = array<i32>} : memref<16x64xf32, #tpu.memory_space<vmem>>, vector<16x64xf32>,
    } else {
    }
    return
  }
  func.func @transform_0(%arg0: i32, %arg1: i32, %arg2: i32) -> (i32, i32) {
    %c0_i32 = arith.constant 0 : i32
    return %arg0, %arg2 : i32, i32
  }
  func.func @transform_1(%arg0: i32, %arg1: i32, %arg2: i32) -> (i32, i32) {
    %c0_i32 = arith.constant 0 : i32
    return %arg2, %arg1 : i32, i32
  }
  func.func @transform_2(%arg0: i32, %arg1: i32, %arg2: i32) -> (i32, i32) {
    %c0_i32 = arith.constant 0 : i32
    %c0_i32_0 = arith.constant 0 : i32
    return %c0_i32, %arg1 : i32, i32
  }
  func.func @transform_3(%arg0: i32, %arg1: i32, %arg2: i32) -> (i32, i32) {
    %c0_i32 = arith.constant 0 : i32
    return %arg0, %arg1 : i32, i32
  }
}

</mosaic_0001>

<bundles_post_ra>
// kernel: tpu_custom_call.1
= control target key start
LH: loop header
LB: loop body
LE: loop exit
PB: predicated region body
PF: predicated region fallthrough
CT: control target
= control target key end

     0   :  { %8 = vsyncpa [#allocation4], 0  ;;  %s392_s0 = inlined_call_operand.hbm [shape: f32[16,64], index: 0, kind: input, shape index: {}]   ;;  %s393_s1 = inlined_call_operand.hbm [shape: f32[64,64], index: 1, kind: input, shape index: {}]   ;;  %s394_s2 = inlined_call_operand.vmem [shape: f32[1,64], index: 2, kind: input, shape index: {}]   ;;  %s395_s3 = inlined_call_operand.hbm [shape: f32[16,64], index: 3, kind: output, shape index: {}]  }
   0x1   :  { %9 = vsyncpa [#allocation7], 0 }
   0x2   :  { %10 = vsyncpa [#allocation5], 0  ;;  %s310_s12 = smov [#allocation3]   ;;  %s238_s16 = scalar_lea.hbm %s392_s0, 256 }
   0x3   :  { %s16_s13 = sshll.u32 %s310_s12, 4  ;;  %p239_p0 = scmp.ne.s32.totalorder %s392_s0, %s238_s16  ;;  %s17_s13 = int_to_ptr.vmem [resolvable:$true] %s16_s13 }
   0x4   :  { %p242_p1 = scmp.lt.u32.totalorder %s238_s16, %s392_s0 }
   0x6   :  { %p244_p2 = pnand %p242_p1, %p239_p0 }
   0x8   :  { %247 = shalt.err (!%p244_p2)
}
   0x9   :  { %s248_s21 = scalar_lea.vmem %s17_s13, 256  ;;  %p253_p4 = scmp.lt.s32.totalorder %s17_s13, %s17_s13 }
   0xa   :  { %p249_p3 = scmp.ne.s32.totalorder %s17_s13, %s248_s21  ;;  %p254_p5 = scmp.lt.s32.totalorder %s248_s21, %s248_s21 }
   0xc   :  { %p255_p6 = por %p254_p5, %p253_p4 }
   0xe   :  { %p256_p7 = pnand %p255_p6, %p249_p3 }
  0x10   :  { %259 = shalt.err (!%p256_p7)
}
  0x11   :  { %s311_s22 = smov 128   ;;  %s312_s23 = smov 8  }
  0x12   :  { %22 = dma.hbm_to_vmem [thread:$0]  %s392_s0, 256, %s17_s13, [#allocation4], %s311_s22, %s311_s22, %s312_s23  }
  0x13   :  { %s313_s26 = smov [#allocation6]   ;;  %s260_s30 = scalar_lea.hbm %s393_s1, 1024 }
  0x14   :  { %s28_s27 = sshll.u32 %s313_s26, 4  ;;  %p261_p8 = scmp.ne.s32.totalorder %s393_s1, %s260_s30  ;;  %s29_s27 = int_to_ptr.vmem [resolvable:$true] %s28_s27 }
  0x15   :  { %p264_p9 = scmp.lt.u32.totalorder %s260_s30, %s393_s1 }
  0x17   :  { %p266_p10 = pnand %p264_p9, %p261_p8 }
  0x19   :  { %269 = shalt.err (!%p266_p10)
}
  0x1a   :  { %s270_s8 = scalar_lea.vmem %s29_s27, 1024  ;;  %p275_p12 = scmp.lt.s32.totalorder %s29_s27, %s29_s27 }
  0x1b   :  { %p271_p11 = scmp.ne.s32.totalorder %s29_s27, %s270_s8  ;;  %p276_p13 = scmp.lt.s32.totalorder %s270_s8, %s270_s8 }
  0x1d   :  { %p277_p0 = por %p276_p13, %p275_p12 }
  0x1f   :  { %p278_p1 = pnand %p277_p0, %p271_p11 }
  0x21   :  { %281 = shalt.err (!%p278_p1)
}
  0x22   :  { %34 = dma.hbm_to_vmem [thread:$0]  %s393_s1, 1024, %s29_s27, [#allocation7], %s311_s22, %s311_s22, %s312_s23  }
  0x23   :  { %304 = dma.done.wait [#allocation4], 256  }
  0x24   :  { %305 = vsyncadd [#allocation4], 4294967040 }
  0x25   :  { %306 = dma.done.wait [#allocation7], 1024  }
  0x26   :  { %307 = vsyncadd [#allocation7], 4294966272  ;;  %vm47_vm0 = vcmask 523264   ;;  %v314_v0 = vmov 0.0   ;;  %v54_v1 = vld [vmem:[#allocation6] sm:$0xff]  ;;  %v55_v2 = vld [vmem:[#allocation6 + $0x8] sm:$0xff] }
  0x27   :  { %49 = vst.msk [vmem:[#allocation2 + $0x8] sm:$0xff] %vm47_vm0, %v314_v0  ;;  %48 = vst.msk [vmem:[#allocation2] sm:$0xff] %vm47_vm0, %v314_v0  ;;  %v56_v3 = vld [vmem:[#allocation6 + $0x10] sm:$0xff]  ;;  %v216_v4 = vpack.c.bf16 %v55_v2, %v54_v1  ;;  %v57_v5 = vld [vmem:[#allocation6 + $0x18] sm:$0xff]  ;;  %s315_s11 = smov [#allocation8]  }
  0x28   :  { %v220_v6 = vpack.c.bf16 %v57_v5, %v56_v3  ;;  %v58_v7 = vld [vmem:[#allocation6 + $0x20] sm:$0xff]  ;;  %v59_v8 = vld [vmem:[#allocation6 + $0x28] sm:$0xff]  ;;  %v52_v9 = vld [vmem:[#allocation3] sm:$0xff]  ;;  %s171_s12 = sshll.u32 %s315_s11, 4  ;;  %s172_s12 = int_to_ptr.vmem [resolvable:$true] %s171_s12 }
  0x29   :  { %217 = vmatprep.subr.bf16.mxu0 %v216_v4  ;;  %213 = vmatprep.mubr.msk.f32.mxu0 %vm47_vm0, %v52_v9  ;;  %v224_v10 = vpack.c.bf16 %v59_v8, %v58_v7  ;;  %v60_v11 = vld [vmem:[#allocation6 + $0x30] sm:$0xff]  ;;  %v61_v12 = vld [vmem:[#allocation6 + $0x38] sm:$0xff]  ;;  %v186_v21 = vld [vmem:[%s394_s2] ss:$0 sm:$0xff]  ;;  %s282_s13 = scalar_lea.vmem %s172_s12, 256  ;;  %p287_p3 = scmp.lt.s32.totalorder %s172_s12, %s172_s12 }
  0x2a   :  { %219 = vmatpush3.bf16.msra.mxu0 %v216_v4  ;;  %v228_v13 = vpack.c.bf16 %v61_v12, %v60_v11  ;;  %v53_v14 = vld [vmem:[#allocation3 + $0x8] sm:$0xff]  ;;  %p283_p2 = scmp.ne.s32.totalorder %s172_s12, %s282_s13  ;;  %p288_p4 = scmp.lt.s32.totalorder %s282_s13, %s282_s13 }
  0x2b   :  { %221 = vmatprep.subr.bf16.mxu0 %v220_v6 }
  0x2c   :  { %p289_p5 = por %p288_p4, %p287_p3 }
  0x2e   :  { %223 = vmatpush3.bf16.msra.mxu0 %v220_v6  ;;  %v51_v15 = vld [vmem:[#allocation2 + $0x8] sm:$0xff]  ;;  %v50_v16 = vld [vmem:[#allocation2] sm:$0xff]  ;;  %p290_p6 = pnand %p289_p5, %p283_p2 }
  0x2f   :  { %225 = vmatprep.subr.bf16.mxu0 %v224_v10 }
  0x32   :  { %227 = vmatpush3.bf16.msra.mxu0 %v224_v10 }
  0x33   :  { %229 = vmatprep.subr.bf16.mxu0 %v228_v13 }
  0x36   :  { %231 = vmatpush3.bf16.msra.mxu0 %v228_v13 }
  0x39   :  { %214 = vmatmul.mubr.msk.f32.vlgmr.msra.gmra.mrb[0].mxu0 %vm47_vm0, %v53_v14 }
 0x10c   :  { %v215_v17 = vpop.f32.mrb[0].mxu0 }
 0x10d   :  { %v145_v18 = vadd.f32 %v215_v17, %v51_v15  ;;  %v135_v19 = vpop.f32.mrb[1].mxu0 }
 0x10e   :  { %v144_v20 = vadd.f32 %v135_v19, %v50_v16 }
 0x10f   :  { %147 = vst.msk [vmem:[#allocation2 + $0x8] sm:$0xff] %vm47_vm0, %v145_v18 }
 0x110   :  { %146 = vst.msk [vmem:[#allocation2] sm:$0xff] %vm47_vm0, %v144_v20 }
 0x116   :  { %v152_v22 = vld [vmem:[#allocation2 + $0x8] sm:$0xff] }
 0x117   :  { %v151_v23 = vld [vmem:[#allocation2] sm:$0xff]  ;;  %v161_v24 = vadd.f32 %v186_v21, %v152_v22 }
 0x118   :  { %v160_v25 = vadd.f32 %v186_v21, %v151_v23 }
 0x119   :  { %v163_v26 = vmax.f32 %v161_v24, 0.0 }
 0x11a   :  { %v162_v27 = vmax.f32 %v160_v25, 0.0 }
 0x11b   :  { %165 = vst.msk [vmem:[#allocation8 + $0x8] sm:$0xff] %vm47_vm0, %v163_v26 }
 0x11c   :  { %164 = vst.msk [vmem:[#allocation8] sm:$0xff] %vm47_vm0, %v162_v27 }
 0x11d   :  { %293 = shalt.err (!%p290_p6)
}
 0x11e   :  { %s294_s15 = scalar_lea.hbm %s395_s3, 256 }
 0x11f   :  { %p295_p7 = scmp.ne.s32.totalorder %s395_s3, %s294_s15  ;;  %p298_p8 = scmp.lt.u32.totalorder %s294_s15, %s395_s3 }
 0x121   :  { %p300_p9 = pnand %p298_p8, %p295_p7 }
 0x123   :  { %303 = shalt.err (!%p300_p9)
}
 0x124   :  { %177 = dma.vmem_to_hbm [thread:$0]  %s172_s12, 256, %s395_s3, [#allocation5], %s311_s22, %s311_s22, %s312_s23  }
 0x125   :  { %308 = dma.done.wait [#allocation5], 256  }
 0x126   :  { %309 = vsyncadd [#allocation5], 4294967040 }
 0x127   :  { %181 = vsyncpa [#allocation4], 1 }
 0x128   :  { %182 = vsyncpa [#allocation7], 1 }
 0x129   :  { %183 = vsyncpa [#allocation5], 1 }

</bundles_post_ra>
